<compile_context>
chip_gen: v5e
topology: v5e:2x2
jax: 0.10.0
libtpu: 0.0.40
codegen_flags: <defaults>
</compile_context>

<pallas_src>
import functools

import jax
import jax.numpy as jnp
from jax import lax
from jax.experimental import pallas as pl
from jax.experimental.pallas import tpu as pltpu


# --------------------------------------------------------------------------
# Pallas kernel: fused squeeze -> excite -> scale for one batch element.
# --------------------------------------------------------------------------
def _se_kernel(x_ref, w1_ref, b1_ref, w2_ref, b2_ref, o_ref, *, inv_m):
    # x_ref: (M, C)  -- M = H*W spatial positions (sublanes), C channels (lanes)
    x = x_ref[...]

    # Squeeze: global average pool over the spatial axis -> (1, C), lane-dense.
    avg = jnp.sum(x, axis=0, keepdims=True) * inv_m

    # Excite: FC1 (C -> 128) + ReLU, FC2 (128 -> C) + Sigmoid.
    h = jnp.dot(avg, w1_ref[...], preferred_element_type=jnp.float32) + b1_ref[...]
    h = jnp.maximum(h, 0.0)                                      # (1, 128)
    g = jnp.dot(h, w2_ref[...], preferred_element_type=jnp.float32) + b2_ref[...]
    g = jax.nn.sigmoid(g)                                        # (1, C)

    # Scale: per-channel gate broadcast over all spatial positions.
    o_ref[...] = (x * g).astype(o_ref.dtype)


# --------------------------------------------------------------------------
# Wrapper: layout glue + pallas_call setup.
# --------------------------------------------------------------------------
def se_block(x_nchw, w1, b1, w2, b2):
    """SEBlock forward.

    x_nchw : (B, C, H, W)  input image (PyTorch NCHW convention)
    w1     : (C, 128)      FC1 weight, already transposed to (in, out)
    b1     : (128,)        FC1 bias
    w2     : (128, C)      FC2 weight, already transposed to (in, out)
    b2     : (C,)          FC2 bias
    returns (B, C, H, W)
    """
    B, C, H, W = x_nchw.shape
    M = H * W
    HID = w1.shape[1]

    # NCHW -> (B, M, C): channels on the lane axis (lane-dense compute/output).
    x = jnp.transpose(x_nchw, (0, 2, 3, 1)).reshape(B, M, C)

    out = pl.pallas_call(
        functools.partial(_se_kernel, inv_m=1.0 / M),
        out_shape=jax.ShapeDtypeStruct((B, M, C), x.dtype),
        grid=(B,),
        in_specs=[
            pl.BlockSpec((None, M, C), lambda b: (b, 0, 0)),   # image tile
            pl.BlockSpec((C, HID), lambda b: (0, 0)),          # FC1 weight
            pl.BlockSpec((1, HID), lambda b: (0, 0)),          # FC1 bias
            pl.BlockSpec((HID, C), lambda b: (0, 0)),          # FC2 weight
            pl.BlockSpec((1, C), lambda b: (0, 0)),            # FC2 bias
        ],
        out_specs=pl.BlockSpec((None, M, C), lambda b: (b, 0, 0)),
        compiler_params=pltpu.CompilerParams(
            dimension_semantics=("parallel",),
        ),
    )(x, w1, b1.reshape(1, HID), w2, b2.reshape(1, C))

    # (B, M, C) -> NCHW
    return jnp.transpose(out.reshape(B, H, W, C), (0, 3, 1, 2))


# --------------------------------------------------------------------------
# Pure-JAX reference (for correctness check).
# --------------------------------------------------------------------------
def se_ref(x, w1, b1, w2, b2):
    avg = jnp.mean(x, axis=(2, 3))                                        # (B, C)
    h = jax.nn.relu(jnp.dot(avg, w1, precision=lax.Precision.HIGHEST) + b1)
    g = jax.nn.sigmoid(jnp.dot(h, w2, precision=lax.Precision.HIGHEST) + b2)
    return x * g[:, :, None, None]


# --------------------------------------------------------------------------
if __name__ == "__main__":
    key = jax.random.PRNGKey(0)
    B, C, H, W, HID = 2, 256, 16, 16, 128   # SEBlock(input_size=16, no_chans=256)

    kx, k1, k2, k3, k4 = jax.random.split(key, 5)
    x = jax.random.normal(kx, (B, C, H, W), jnp.float32)

    # PyTorch nn.Linear default init: U(-1/sqrt(fan_in), 1/sqrt(fan_in)).
    bound1 = 1.0 / (C ** 0.5)
    w1 = jax.random.uniform(k1, (C, HID), jnp.float32, -bound1, bound1)
    b1 = jax.random.uniform(k2, (HID,), jnp.float32, -bound1, bound1)
    bound2 = 1.0 / (HID ** 0.5)
    w2 = jax.random.uniform(k3, (HID, C), jnp.float32, -bound2, bound2)
    b2 = jax.random.uniform(k4, (C,), jnp.float32, -bound2, bound2)

    out = jax.jit(se_block)(x, w1, b1, w2, b2)
    out = jax.block_until_ready(out)

    ref = se_ref(x, w1, b1, w2, b2)
    if out.shape != x.shape:
        raise AssertionError(f"bad output shape {out.shape} vs {x.shape}")
    if not jnp.allclose(out, ref, rtol=1e-3, atol=1e-3):
        err = float(jnp.max(jnp.abs(out - ref)))
        raise AssertionError(f"Pallas SEBlock mismatch vs JAX reference, max abs err {err}")

    print("KERNEL_OK")
</pallas_src>

<mosaic_0001>
module attributes {stable_mosaic.version = 11 : i64} {
  func.func @_se_kernel(%arg0: i32, %arg1: memref<1x256x256xf32, #tpu.memory_space<vmem>>, %arg2: memref<256x128xf32, #tpu.memory_space<vmem>>, %arg3: memref<1x128xf32, #tpu.memory_space<vmem>>, %arg4: memref<128x256xf32, #tpu.memory_space<vmem>>, %arg5: memref<1x256xf32, #tpu.memory_space<vmem>>, %arg6: memref<1x256x256xf32, #tpu.memory_space<vmem>>) attributes {dimension_semantics = [#tpu.dimension_semantics<parallel>], iteration_bounds = array<i64: 2>, scalar_prefetch = 0 : i64, scratch_operands = 0 : i64, tpu.core_type = #tpu.core_type<tc>, window_params = [{transform_indices = @transform_0, window_bounds = array<i64: 1, 256, 256>}, {pipeline_mode = #tpu.pipeline_mode<synchronous>, transform_indices = @transform_1, window_bounds = array<i64: 256, 128>}, {pipeline_mode = #tpu.pipeline_mode<synchronous>, transform_indices = @transform_2, window_bounds = array<i64: 1, 128>}, {pipeline_mode = #tpu.pipeline_mode<synchronous>, transform_indices = @transform_3, window_bounds = array<i64: 128, 256>}, {pipeline_mode = #tpu.pipeline_mode<synchronous>, transform_indices = @transform_4, window_bounds = array<i64: 1, 256>}, {transform_indices = @transform_5, window_bounds = array<i64: 1, 256, 256>}]} {
    %c0 = arith.constant 0 : index
    %c0_0 = arith.constant 0 : index
    %c0_1 = arith.constant 0 : index
    %0 = vector.load %arg1[%c0, %c0_0, %c0_1] : memref<1x256x256xf32, #tpu.memory_space<vmem>>, vector<1x256x256xf32>
    %1 = vector.shape_cast %0 : vector<1x256x256xf32> to vector<256x256xf32>
    %cst = arith.constant dense<0.000000e+00> : vector<256xf32>
    %2 = vector.multi_reduction <add>, %1, %cst [0] : vector<256x256xf32> to vector<256xf32>
    %3 = vector.shape_cast %2 : vector<256xf32> to vector<1x256xf32>
    %cst_2 = arith.constant 3.906250e-03 : f32
    %4 = vector.broadcast %cst_2 : f32 to vector<1x256xf32>
    %5 = arith.mulf %3, %4 : vector<1x256xf32>
    %c0_3 = arith.constant 0 : index
    %c0_4 = arith.constant 0 : index
    %6 = vector.load %arg2[%c0_3, %c0_4] : memref<256x128xf32, #tpu.memory_space<vmem>>, vector<256x128xf32>
    %cst_5 = arith.constant dense<0.000000e+00> : vector<1x128xf32>
    %7 = tpu.matmul %5, %6, %cst_5 {dimension_numbers = #tpu.dot_dimension_numbers<[1], [0], [0], [1], [0, 0, 1, 1], [], []>} : vector<1x256xf32>, vector<256x128xf32>, vector<1x128xf32> -> vector<1x128xf32>
    %c0_6 = arith.constant 0 : index
    %c0_7 = arith.constant 0 : index
    %8 = vector.load %arg3[%c0_6, %c0_7] : memref<1x128xf32, #tpu.memory_space<vmem>>, vector<1x128xf32>
    %9 = arith.addf %7, %8 : vector<1x128xf32>
    %cst_8 = arith.constant 0.000000e+00 : f32
    %10 = vector.broadcast %cst_8 : f32 to vector<1x128xf32>
    %11 = arith.maximumf %9, %10 : vector<1x128xf32>
    %c0_9 = arith.constant 0 : index
    %c0_10 = arith.constant 0 : index
    %12 = vector.load %arg4[%c0_9, %c0_10] : memref<128x256xf32, #tpu.memory_space<vmem>>, vector<128x256xf32>
    %cst_11 = arith.constant dense<0.000000e+00> : vector<1x256xf32>
    %13 = tpu.matmul %11, %12, %cst_11 {dimension_numbers = #tpu.dot_dimension_numbers<[1], [0], [0], [1], [0, 0, 1, 1], [], []>} : vector<1x128xf32>, vector<128x256xf32>, vector<1x256xf32> -> vector<1x256xf32>
    %c0_12 = arith.constant 0 : index
    %c0_13 = arith.constant 0 : index
    %14 = vector.load %arg5[%c0_12, %c0_13] : memref<1x256xf32, #tpu.memory_space<vmem>>, vector<1x256xf32>
    %15 = arith.addf %13, %14 : vector<1x256xf32>
    %16 = arith.negf %15 : vector<1x256xf32>
    %17 = math.exp %16 : vector<1x256xf32>
    %cst_14 = arith.constant 1.000000e+00 : f32
    %18 = vector.broadcast %cst_14 : f32 to vector<1x256xf32>
    %19 = arith.addf %18, %17 : vector<1x256xf32>
    %20 = arith.divf %18, %19 : vector<1x256xf32>
    %21 = vector.broadcast %20 : vector<1x256xf32> to vector<256x256xf32>
    %22 = arith.mulf %1, %21 : vector<256x256xf32>
    %c0_15 = arith.constant 0 : index
    %c0_16 = arith.constant 0 : index
    %c0_17 = arith.constant 0 : index
    %23 = vector.load %arg6[%c0_15, %c0_16, %c0_17] : memref<1x256x256xf32, #tpu.memory_space<vmem>>, vector<1x256x256xf32>
    %24 = vector.shape_cast %23 : vector<1x256x256xf32> to vector<256x256xf32>
    %25 = vector.shape_cast %22 : vector<256x256xf32> to vector<1x256x256xf32>
    tpu.vector_store %arg6[%c0_15, %c0_16, %c0_17], %25 {strides = array<i32>} : memref<1x256x256xf32, #tpu.memory_space<vmem>>, vector<1x256x256xf32>,
    return
  }
  func.func @transform_0(%arg0: i32) -> (i32, i32, i32) {
    %c0_i32 = arith.constant 0 : i32
    %c0_i32_0 = arith.constant 0 : i32
    %c0_i32_1 = arith.constant 0 : i32
    return %arg0, %c0_i32, %c0_i32_0 : i32, i32, i32
  }
  func.func @transform_1(%arg0: i32) -> (i32, i32) {
    %c0_i32 = arith.constant 0 : i32
    %c0_i32_0 = arith.constant 0 : i32
    %c0_i32_1 = arith.constant 0 : i32
    return %c0_i32, %c0_i32_0 : i32, i32
  }
  func.func @transform_2(%arg0: i32) -> (i32, i32) {
    %c0_i32 = arith.constant 0 : i32
    %c0_i32_0 = arith.constant 0 : i32
    %c0_i32_1 = arith.constant 0 : i32
    return %c0_i32, %c0_i32_0 : i32, i32
  }
  func.func @transform_3(%arg0: i32) -> (i32, i32) {
    %c0_i32 = arith.constant 0 : i32
    %c0_i32_0 = arith.constant 0 : i32
    %c0_i32_1 = arith.constant 0 : i32
    return %c0_i32, %c0_i32_0 : i32, i32
  }
  func.func @transform_4(%arg0: i32) -> (i32, i32) {
    %c0_i32 = arith.constant 0 : i32
    %c0_i32_0 = arith.constant 0 : i32
    %c0_i32_1 = arith.constant 0 : i32
    return %c0_i32, %c0_i32_0 : i32, i32
  }
  func.func @transform_5(%arg0: i32) -> (i32, i32, i32) {
    %c0_i32 = arith.constant 0 : i32
    %c0_i32_0 = arith.constant 0 : i32
    %c0_i32_1 = arith.constant 0 : i32
    return %arg0, %c0_i32, %c0_i32_0 : i32, i32, i32
  }
}

</mosaic_0001>

<bundles_post_ra>
// kernel: se_block.1
= control target key start
LH: loop header
LB: loop body
LE: loop exit
PB: predicated region body
PF: predicated region fallthrough
CT: control target
= control target key end

     0   :  { %10 = vsyncpa [#allocation3], 0  ;;  %s1770_s0 = inlined_call_operand.hbm [shape: f32[2,256,256], index: 0, kind: input, shape index: {}]   ;;  %s1771_s1 = inlined_call_operand.hbm [shape: f32[256,128], index: 1, kind: input, shape index: {}]   ;;  %s1772_s2 = inlined_call_operand.vmem [shape: f32[1,128], index: 2, kind: input, shape index: {}]   ;;  %s1773_s3 = inlined_call_operand.hbm [shape: f32[128,256], index: 3, kind: input, shape index: {}]   ;;  %s1774_s4 = inlined_call_operand.vmem [shape: f32[1,256], index: 4, kind: input, shape index: {}]   ;;  %s1775_s5 = inlined_call_operand.hbm [shape: f32[2,256,256], index: 5, kind: output, shape index: {}]  }
   0x1   :  { %12 = vsyncpa [#allocation3 + $0x1], 0 }
   0x2   :  { %13 = vsyncpa [#allocation6], 0 }
   0x3   :  { %14 = vsyncpa [#allocation4], 0 }
   0x4   :  { %16 = vsyncpa [#allocation4 + $0x1], 0  ;;  %s1149_s18 = smov 0   ;;  %s1151_s19 = smov 0  }
   0x5   :  { %s1153_s20 = smov 0   ;;  %s1155_s21 = smov 0  }
   0x6 LB: > { %s1170_s22 = sadd.s32 4294967295, %s1109_s21   ;;  %s846_s23 = sadd.s32 4294967294, %s1109_s21   ;;  %s1109_s21 = sphi %s1155_s21, %s1841_s21   ;;  %s1105_s20 = sphi %s1153_s20, %s1840_s20   ;;  %s1101_s19 = sphi %s1151_s19, %s1839_s19   ;;  %s1097_s18 = sphi %s1149_s18, %s1838_s18  }
   0x7   : > { %p42_p0 = scmp.ne.s32.totalorder %s1101_s19, %s1097_s18  ;;  %p43_p1 = scmp.eq.s32.totalorder %s1170_s22, 0 }
   0x8   : > { %p150_p2 = scmp.eq.s32.totalorder %s1170_s22, 1  ;;  %p156_p3 = scmp.eq.s32.totalorder %s846_s23, 1 }
   0x9   : > { %p1179_p4 = por %p43_p1, %p42_p0  ;;  %p847_p5 = scmp.ge.s32.totalorder %s1109_s21, 1 }
   0xa   : > { %p1184_p6 = por %p156_p3, %p42_p0  ;;  %p163_p7 = scmp.lt.s32.totalorder %s1109_s21, 3 }
   0xb   : > { %s174_s28 = sshll.u32 %s1771_s1, 4  ;;  %s1111_s30 = smov [#allocation5]   ;;  %s175_s28 = int_to_ptr.hbm [resolvable:$true] %s174_s28 }
   0xc   : > { %p1192_p8 = pnand %p847_p5, %p163_p7  ;;  %s176_s6 = sshll.u32 %s1111_s30, 4  ;;  %s177_s6 = int_to_ptr.vmem [resolvable:$true] %s176_s6 }
   0xd   : > { %s191_s9 = sshll.u32 %s1773_s3, 4  ;;  %s1112_s10 = smov 128   ;;  %s192_s9 = int_to_ptr.hbm [resolvable:$true] %s191_s9 }
   0xe   : > { %p880_p9 = pneg %p1192_p8  ;;  %s1113_s11 = smov 8  }
   0xf   : > { %s1114_s12 = smov [#allocation7]   ;;  %s1776_s14 = smov 256  }
  0x10   : > { %p881_p10 = pnand %p880_p9, %p43_p1  ;;  %s193_s13 = sshll.u32 %s1114_s12, 4  ;;  %s194_s13 = int_to_ptr.vmem [resolvable:$true] %s193_s13 }
  0x11   : > { %s1116_s15 = smov 16   ;;  %s1208_s16 = sadd.s32 1, %s1109_s21  }
  0x12   : > { %883 = dma.hbm_to_vmem [thread:$0]  (!%p881_p10), %s175_s28, 4096, %s177_s6, [#allocation6], %s1112_s10, %s1112_s10, %s1113_s11  }
  0x13   : > { %886 = dma.hbm_to_vmem [thread:$0]  (!%p881_p10), %s192_s9, 4096, %s194_s13, [#allocation6], %s1776_s14, %s1776_s14, %s1116_s15  }
  0x14   : > { %s26_s17 = ssub.s32 %s1109_s21, %s1208_s16  ;;  %s29_s23 = sadd.s32 1, %s1105_s20 }
  0x15   : > { %p27_p12 = scmp.eq.s32.totalorder %s26_s17, 0  ;;  %p36_p13 = scmp.ne.s32.totalorder %s1105_s20, %s1101_s19 }
  0x16   : > { %p37_p0 = scmp.eq.s32.totalorder %s1109_s21, 0  ;;  %p897_p7 = scmp.lt.s32.totalorder %s1109_s21, 2 }
  0x17   : > { %s1217_s26 = scalar_select %p27_p12, %s1105_s20, %s29_s23  }
  0x18   : > { %p38_p3 = por %p37_p0, %p36_p13  ;;  %p1221_p5 = por %p150_p2, %p36_p13 }
  0x19   : > { %s210_s28 = sand.u32 1, %s1105_s20   ;;  %s866_s6 = sshll.u32 %s1109_s21, 9 }
  0x1a   : > { %s851_s30 = sshll.u32 %s210_s28, 9  ;;  %s219_s9 = scalar_lea.hbm %s1770_s0, %s866_s6 }
  0x1b   : > { %s214_s10 = scalar_lea.vmem [#allocation2], %s851_s30  ;;  %s220_s12 = sshll.u32 %s219_s9, 4  ;;  %s221_s12 = int_to_ptr.hbm [resolvable:$true] %s220_s12 }
  0x1c   : > { %s222_s11 = sshll.u32 %s214_s10, 4  ;;  %p1231_p9 = pnand %p897_p7, %p38_p3  ;;  %s223_s11 = int_to_ptr.vmem [resolvable:$true] %s222_s11 }
  0x1d   : > { %s211_s17 = scalar_lea.sflag [#allocation3], %s210_s28  ;;  %s1009_s23 = sshra.s32 %s221_s12, 4  ;;  %s1010_s23 = int_to_ptr.hbm [resolvable:$true] %s1009_s23 }
  0x1e   : > { %s1011_s14 = scalar_lea.hbm %s1010_s23, 512  ;;  %p1013_p10 = pneg %p1231_p9 }
  0x1f   : > { %p1012_p2 = scmp.ne.s32.totalorder %s1010_s23, %s1011_s14  ;;  %s1016_s7 = scalar_lea.hbm %s1770_s0, 1024 }
  0x20   : > { %p1017_p0 = scmp.lt.s32.totalorder %s1010_s23, %s1770_s0  ;;  %p1018_p3 = scmp.lt.s32.totalorder %s1016_s7, %s1011_s14 }
  0x21   : > { %p1014_p12 = pnand %p1013_p10, %p1012_p2 }
  0x22   : > { %p1019_p7 = por %p1018_p3, %p1017_p0 }
  0x23   : > { %p1015_p13 = pneg %p1014_p12 }
  0x25   : > { %p1020_p11 = pnand %p1019_p7, %p1015_p13 }
  0x27   : > { %1023 = shalt.err (!%p1020_p11)
}
  0x28   : > { %s1800_s28 = smov 256   ;;  %234 = sbr.rel (%p1192_p8) target bundleno = 504 (0x1f8), region = 40 }
  0x29   : > { %890 = dma.hbm_to_vmem [thread:$0]  (!%p1231_p9), %s221_s12, 8192, %s223_s11, %s211_s17, %s1800_s28, %s1800_s28, %s1116_s15  }
  0x2d   : > { %s1251_s10 = sand.u32 1, %s1101_s19  }
  0x2e   : > { %s855_s14 = sshll.u32 %s1251_s10, 9  ;;  %s237_s23 = scalar_lea.sflag [#allocation3], %s1251_s10 }
  0x2f   : > { %s1257_s6 = scalar_lea.vmem [#allocation2], %s855_s14 }
  0x30   : > { %1084 = dma.done.wait (%p1179_p4), %s237_s23, 8192  }
  0x31   : > { %1086 = vsyncadd (%p1179_p4), %s237_s23, 4294959104 }
  0x32   : > { %1088 = dma.done.wait (%p43_p1), [#allocation6], 8192  }
  0x33   : > { %1090 = vsyncadd (%p43_p1), [#allocation6], 4294959104  ;;  %v433_v0 = vld [vmem:[#allocation5 + $0x78] sm:$0xff]  ;;  %v432_v1 = vld [vmem:[#allocation5 + $0x70] sm:$0xff]  ;;  %s1546_s12 = scalar_lea.vmem [#allocation8], %s855_s14  ;;  %s867_s13 = sshll.u32 %s1170_s22, 9 }
  0x34   : > { %v449_v2 = vld [vmem:[#allocation5 + $0xf8] sm:$0xff]  ;;  %451 = vmatpush.msra.mxu0 %v433_v0  ;;  %v448_v3 = vld [vmem:[#allocation5 + $0xf0] sm:$0xff]  ;;  %v431_v4 = vld [vmem:[#allocation5 + $0x68] sm:$0xff]  ;;  %s750_s7 = scalar_lea.hbm %s1775_s5, %s867_s13  ;;  %s751_s22 = sshll.u32 %s1546_s12, 4  ;;  %s752_s22 = int_to_ptr.vmem [resolvable:$true] %s751_s22 }
  0x35   : > { %471 = vmatpush.msra.mxu1 %v449_v2  ;;  %v447_v5 = vld [vmem:[#allocation5 + $0xe8] sm:$0xff]  ;;  %v430_v6 = vld [vmem:[#allocation5 + $0x60] sm:$0xff]  ;;  %v429_v8 = vld [vmem:[#allocation5 + $0x58] sm:$0xff]  ;;  %s753_s8 = sshll.u32 %s750_s7, 4  ;;  %s739_s9 = scalar_lea.sflag [#allocation4], %s1251_s10  ;;  %s754_s8 = int_to_ptr.hbm [resolvable:$true] %s753_s8 }
  0x36   : > { %452 = vmatpush.msra.mxu0 %v432_v1  ;;  %v446_v7 = vld [vmem:[#allocation5 + $0xe0] sm:$0xff]  ;;  %v445_v9 = vld [vmem:[#allocation5 + $0xd8] sm:$0xff]  ;;  %v428_v10 = vld [vmem:[#allocation5 + $0x50] sm:$0xff]  ;;  %s1053_s28 = sshra.s32 %s754_s8, 4  ;;  %s1059_s24 = scalar_lea.hbm %s1775_s5, 1024  ;;  %s1054_s28 = int_to_ptr.hbm [resolvable:$true] %s1053_s28 }
  0x37   : > { %472 = vmatpush.msra.mxu1 %v448_v3  ;;  %v444_v11 = vld [vmem:[#allocation5 + $0xd0] sm:$0xff]  ;;  %v427_v12 = vld [vmem:[#allocation5 + $0x48] sm:$0xff]  ;;  %v1268_v14 = vld [vmem:[%s1257_s6] sm:$0xff]  ;;  %s1055_s14 = scalar_lea.hbm %s1054_s28, 512  ;;  %p1060_p11 = scmp.lt.s32.totalorder %s1054_s28, %s1775_s5 }
  0x38   : > { %453 = vmatpush.msra.mxu0 %v431_v4  ;;  %v443_v13 = vld [vmem:[#allocation5 + $0xc8] sm:$0xff]  ;;  %v1271_v15 = vld [vmem:[%s1257_s6 + $0x10] sm:$0xff]  ;;  %v1274_v16 = vld [vmem:[%s1257_s6 + $0x20] sm:$0xff]  ;;  %p1056_p1 = scmp.ne.s32.totalorder %s1054_s28, %s1055_s14  ;;  %p1061_p9 = scmp.lt.s32.totalorder %s1059_s24, %s1055_s14 }
  0x39   : > { %473 = vmatpush.msra.mxu1 %v447_v5  ;;  %v342_v17 = vadd.f32 %v1271_v15, %v1268_v14  ;;  %v426_v18 = vld [vmem:[#allocation5 + $0x40] sm:$0xff]  ;;  %v1279_v20 = vld [vmem:[%s1257_s6 + $0x30] sm:$0xff]  ;;  %v425_v22 = vld [vmem:[#allocation5 + $0x38] sm:$0xff] }
  0x3a   : > { %454 = vmatpush.msra.mxu0 %v430_v6  ;;  %v442_v19 = vld [vmem:[#allocation5 + $0xc0] sm:$0xff]  ;;  %v441_v23 = vld [vmem:[#allocation5 + $0xb8] sm:$0xff]  ;;  %v424_v26 = vld [vmem:[#allocation5 + $0x30] sm:$0xff]  ;;  %p1057_p4 = pnand %p1056_p1, %p1221_p5  ;;  %p1062_p2 = por %p1061_p9, %p1060_p11 }
  0x3b   : > { %474 = vmatpush.msra.mxu1 %v446_v7  ;;  %v343_v21 = vadd.f32 %v342_v17, %v1274_v16  ;;  %v1283_v24 = vld [vmem:[%s1257_s6 + $0x40] sm:$0xff]  ;;  %v440_v27 = vld [vmem:[#allocation5 + $0xb0] sm:$0xff]  ;;  %v423_v30 = vld [vmem:[#allocation5 + $0x28] sm:$0xff] }
  0x3c   : > { %455 = vmatpush.msra.mxu0 %v429_v8  ;;  %v1287_v28 = vld [vmem:[%s1257_s6 + $0x50] sm:$0xff]  ;;  %v439_v31 = vld [vmem:[#allocation5 + $0xa8] sm:$0xff]  ;;  %v1291_v32 = vld [vmem:[%s1257_s6 + $0x60] sm:$0xff]  ;;  %p1058_p8 = pneg %p1057_p4 }
  0x3d   : > { %475 = vmatpush.msra.mxu1 %v445_v9  ;;  %v344_v25 = vadd.f32 %v343_v21, %v1279_v20  ;;  %v422_v34 = vld [vmem:[#allocation5 + $0x20] sm:$0xff]  ;;  %v1295_v36 = vld [vmem:[%s1257_s6 + $0x70] sm:$0xff]  ;;  %v1299_v38 = vld [vmem:[%s1257_s6 + $0x8] sm:$0xff] }
  0x3e   : > { %456 = vmatpush.msra.mxu0 %v428_v10  ;;  %v438_v35 = vld [vmem:[#allocation5 + $0xa0] sm:$0xff]  ;;  %v1302_v39 = vld [vmem:[%s1257_s6 + $0x18] sm:$0xff]  ;;  %v1305_v40 = vld [vmem:[%s1257_s6 + $0x28] sm:$0xff]  ;;  %p1063_p10 = pnand %p1062_p2, %p1058_p8 }
  0x3f   : > { %476 = vmatpush.msra.mxu1 %v444_v11  ;;  %v345_v29 = vadd.f32 %v344_v25, %v1283_v24  ;;  %v421_v41 = vld [vmem:[#allocation5 + $0x18] sm:$0xff]  ;;  %v1308_v43 = vld [vmem:[%s1257_s6 + $0x80] sm:$0xff]  ;;  %v379_v44 = vadd.f32 %v1302_v39, %v1299_v38  ;;  %v420_v47 = vld [vmem:[#allocation5 + $0x10] sm:$0xff] }
  0x40   : > { %457 = vmatpush.msra.mxu0 %v427_v12  ;;  %v437_v42 = vld [vmem:[#allocation5 + $0x98] sm:$0xff]  ;;  %v436_v48 = vld [vmem:[#allocation5 + $0x90] sm:$0xff]  ;;  %v1322_v52 = vld [vmem:[%s1257_s6 + $0x48] sm:$0xff] }
  0x41   : > { %477 = vmatpush.msra.mxu1 %v443_v13  ;;  %v346_v33 = vadd.f32 %v345_v29, %v1287_v28  ;;  %v1314_v46 = vld [vmem:[%s1257_s6 + $0x38] sm:$0xff]  ;;  %v1317_v49 = vld [vmem:[%s1257_s6 + $0x90] sm:$0xff]  ;;  %v380_v50 = vadd.f32 %v379_v44, %v1305_v40  ;;  %v419_v53 = vld [vmem:[#allocation5 + $0x8] sm:$0xff] }
  0x42   : > { %458 = vmatpush.msra.mxu0 %v426_v18  ;;  %v435_v54 = vld [vmem:[#allocation5 + $0x88] sm:$0xff]  ;;  %v1325_v55 = vld [vmem:[%s1257_s6 + $0xa0] sm:$0xff]  ;;  %v1330_v58 = vld [vmem:[%s1257_s6 + $0x58] sm:$0xff] }
  0x43   : > { %478 = vmatpush.msra.mxu1 %v442_v19  ;;  %v347_v37 = vadd.f32 %v346_v33, %v1291_v32  ;;  %v381_v56 = vadd.f32 %v380_v50, %v1314_v46  ;;  %v418_v59 = vld [vmem:[#allocation5] sm:$0xff]  ;;  %v1333_v60 = vld [vmem:[%s1257_s6 + $0xb0] sm:$0xff]  ;;  %v1338_v63 = vld [vmem:[%s1257_s6 + $0x68] sm:$0xff] }
  0x44   : > { %459 = vmatpush.msra.mxu0 %v425_v22  ;;  %v1341_v0 = vld [vmem:[%s1257_s6 + $0xc0] sm:$0xff]  ;;  %v1346_v3 = vld [vmem:[%s1257_s6 + $0x78] sm:$0xff]  ;;  %v1349_v4 = vld [vmem:[%s1257_s6 + $0xd0] sm:$0xff] }
  0x45   : > { %479 = vmatpush.msra.mxu1 %v441_v23  ;;  %v348_v45 = vadd.f32 %v347_v37, %v1295_v36  ;;  %v382_v61 = vadd.f32 %v381_v56, %v1322_v52  ;;  %v1354_v7 = vld [vmem:[%s1257_s6 + $0x88] sm:$0xff]  ;;  %v1357_v8 = vld [vmem:[%s1257_s6 + $0xe0] sm:$0xff]  ;;  %v1362_v11 = vld [vmem:[%s1257_s6 + $0x98] sm:$0xff] }
  0x46   : > { %460 = vmatpush.msra.mxu0 %v424_v26  ;;  %v1365_v12 = vld [vmem:[%s1257_s6 + $0xf0] sm:$0xff]  ;;  %v1370_v18 = vld [vmem:[%s1257_s6 + $0xa8] sm:$0xff]  ;;  %v1373_v19 = vld [vmem:[%s1257_s6 + $0x100] sm:$0xff] }
  0x47   : > { %480 = vmatpush.msra.mxu1 %v440_v27  ;;  %v349_v51 = vadd.f32 %v348_v45, %v1308_v43  ;;  %v383_v1 = vadd.f32 %v382_v61, %v1330_v58  ;;  %v1378_v23 = vld [vmem:[%s1257_s6 + $0xb8] sm:$0xff]  ;;  %v1381_v25 = vld [vmem:[%s1257_s6 + $0x110] sm:$0xff]  ;;  %v1386_v29 = vld [vmem:[%s1257_s6 + $0xc8] sm:$0xff] }
  0x48   : > { %461 = vmatpush.msra.mxu0 %v423_v30  ;;  %1801 = vst [vmem:[#allocation12_spill] sm:$0xff] %v1386_v29  ;;  %v1389_v30 = vld [vmem:[%s1257_s6 + $0x120] sm:$0xff]  ;;  %v1413_v50 = vld [vmem:[%s1257_s6 + $0x150] sm:$0xff]  ;;  %v1426_v61 = vld [vmem:[%s1257_s6 + $0x118] sm:$0xff] }
  0x49   : > { %481 = vmatpush.msra.mxu1 %v439_v31  ;;  %v350_v57 = vadd.f32 %v349_v51, %v1317_v49  ;;  %v384_v5 = vadd.f32 %v383_v1, %v1338_v63  ;;  %v1405_v44 = vld [vmem:[%s1257_s6 + $0x140] sm:$0xff]  ;;  %1806 = vst [vmem:[#allocation17_spill] sm:$0xff] %v1426_v61 }
  0x4a   : > { %462 = vmatpush.msra.mxu0 %v422_v34  ;;  %v1394_v34 = vld [vmem:[%s1257_s6 + $0xd8] sm:$0xff]  ;;  %v1421_v56 = vld [vmem:[%s1257_s6 + $0x160] sm:$0xff] }
  0x4b   : > { %482 = vmatpush.msra.mxu1 %v438_v35  ;;  %v351_v62 = vadd.f32 %v350_v57, %v1325_v55  ;;  %v385_v9 = vadd.f32 %v384_v5, %v1346_v3  ;;  %1802 = vst [vmem:[#allocation13_spill] sm:$0xff] %v1394_v34  ;;  %v1397_v35 = vld [vmem:[%s1257_s6 + $0x130] sm:$0xff]  ;;  %v1434_v5 = vld [vmem:[%s1257_s6 + $0x128] sm:$0xff] }
  0x4c   : > { %463 = vmatpush.msra.mxu0 %v421_v41  ;;  %1807 = vst [vmem:[#allocation18_spill] sm:$0xff] %v1434_v5 }
  0x4d   : > { %483 = vmatpush.msra.mxu1 %v437_v42  ;;  %v352_v2 = vadd.f32 %v351_v62, %v1333_v60  ;;  %v386_v13 = vadd.f32 %v385_v9, %v1354_v7  ;;  %v1402_v42 = vld [vmem:[%s1257_s6 + $0xe8] sm:$0xff]  ;;  %v1429_v62 = vld [vmem:[%s1257_s6 + $0x170] sm:$0xff] }
  0x4e   : > { %464 = vmatpush.msra.mxu0 %v420_v47  ;;  %1803 = vst [vmem:[#allocation14_spill] sm:$0xff] %v1402_v42 }
  0x4f   : > { %484 = vmatpush.msra.mxu1 %v436_v48  ;;  %v353_v6 = vadd.f32 %v352_v2, %v1341_v0  ;;  %v387_v21 = vadd.f32 %v386_v13, %v1362_v11  ;;  %v1410_v48 = vld [vmem:[%s1257_s6 + $0xf8] sm:$0xff]  ;;  %v434_v13 = vld [vmem:[#allocation5 + $0x80] sm:$0xff] }
  0x50   : > { %465 = vmatpush.msra.mxu0 %v419_v53  ;;  %1804 = vst [vmem:[#allocation15_spill] sm:$0xff] %v1410_v48 }
  0x51   : > { %485 = vmatpush.msra.mxu1 %v435_v54  ;;  %v354_v10 = vadd.f32 %v353_v6, %v1349_v4  ;;  %v388_v26 = vadd.f32 %v387_v21, %v1370_v18  ;;  %v1418_v54 = vld [vmem:[%s1257_s6 + $0x108] sm:$0xff]  ;;  %v1437_v6 = vld [vmem:[%s1257_s6 + $0x180] sm:$0xff]  ;;  %v1445_v21 = vld [vmem:[%s1257_s6 + $0x190] sm:$0xff] }
  0x52   : > { %466 = vmatpush.msra.mxu0 %v418_v59  ;;  %1805 = vst [vmem:[#allocation16_spill] sm:$0xff] %v1418_v54 }
  0x53   : > { %v355_v17 = vadd.f32 %v354_v10, %v1357_v8  ;;  %v389_v31 = vadd.f32 %v388_v26, %v1378_v23  ;;  %486 = vmatpush.msra.mxu1 %v434_v13  ;;  %v1481_v13 = vld [vmem:[%s1257_s6 + $0x1e0] sm:$0xff] }
  0x55   : > { %v356_v22 = vadd.f32 %v355_v17, %v1365_v12  ;;  %v390_v37 = vadd.f32 %v389_v31, %v1386_v29  ;;  %v1442_v17 = vld [vmem:[%s1257_s6 + $0x138] sm:$0xff]  ;;  %v1453_v31 = vld [vmem:[%s1257_s6 + $0x1a0] sm:$0xff] }
  0x56   : > { %1808 = vst [vmem:[#allocation19_spill] sm:$0xff] %v1442_v17  ;;  %v1519_v29 = vld [vmem:[%s1257_s6 + $0x1f8] sm:$0xff] }
  0x57   : > { %v357_v27 = vadd.f32 %v356_v22, %v1373_v19  ;;  %v391_v45 = vadd.f32 %v390_v37, %v1394_v34  ;;  %v1515_v34 = vld [vmem:[%s1257_s6 + $0x1e8] sm:$0xff] }
  0x58   : > { %1818 = vst [vmem:[#allocation29_spill] sm:$0xff] %v1515_v34 }
  0x59   : > { %v358_v33 = vadd.f32 %v357_v27, %v1381_v25  ;;  %v392_v51 = vadd.f32 %v391_v45, %v1402_v42  ;;  %v1450_v27 = vld [vmem:[%s1257_s6 + $0x148] sm:$0xff]  ;;  %v1461_v45 = vld [vmem:[%s1257_s6 + $0x1b0] sm:$0xff] }
  0x5a   : > { %1809 = vst [vmem:[#allocation20_spill] sm:$0xff] %v1450_v27  ;;  %v1507_v42 = vld [vmem:[%s1257_s6 + $0x1c8] sm:$0xff] }
  0x5b   : > { %v359_v41 = vadd.f32 %v358_v33, %v1389_v30  ;;  %v393_v57 = vadd.f32 %v392_v51, %v1410_v48  ;;  %v515_v48 = vld [vmem:[#allocation7 + $0xb8] sm:$0xff]  ;;  %1817 = vst [vmem:[#allocation28_spill] sm:$0xff] %v1507_v42 }
  0x5d   : > { %v360_v47 = vadd.f32 %v359_v41, %v1397_v35  ;;  %v394_v1 = vadd.f32 %v393_v57, %v1418_v54  ;;  %v1458_v41 = vld [vmem:[%s1257_s6 + $0x158] sm:$0xff]  ;;  %v1469_v57 = vld [vmem:[%s1257_s6 + $0x1c0] sm:$0xff]  ;;  %v517_v54 = vld [vmem:[#allocation7 + $0xc8] sm:$0xff] }
  0x5e   : > { %1810 = vst [vmem:[#allocation21_spill] sm:$0xff] %v1458_v41 }
  0x5f   : > { %v361_v53 = vadd.f32 %v360_v47, %v1405_v44  ;;  %v395_v9 = vadd.f32 %v394_v1, %v1426_v61  ;;  %v516_v61 = vld [vmem:[#allocation7 + $0xc0] sm:$0xff] }
  0x61   : > { %v362_v59 = vadd.f32 %v361_v53, %v1413_v50  ;;  %v396_v22 = vadd.f32 %v395_v9, %v1434_v5  ;;  %v1466_v53 = vld [vmem:[%s1257_s6 + $0x168] sm:$0xff]  ;;  %v1477_v9 = vld [vmem:[%s1257_s6 + $0x1d0] sm:$0xff]  ;;  %v519_v5 = vld [vmem:[#allocation7 + $0xd8] sm:$0xff] }
  0x62   : > { %1811 = vst [vmem:[#allocation22_spill] sm:$0xff] %v1466_v53 }
  0x63   : > { %v363_v2 = vadd.f32 %v362_v59, %v1421_v56  ;;  %v397_v33 = vadd.f32 %v396_v22, %v1442_v17  ;;  %v518_v17 = vld [vmem:[#allocation7 + $0xd0] sm:$0xff] }
  0x65   : > { %v364_v10 = vadd.f32 %v363_v2, %v1429_v62  ;;  %v398_v47 = vadd.f32 %v397_v33, %v1450_v27  ;;  %v1474_v2 = vld [vmem:[%s1257_s6 + $0x178] sm:$0xff] }
  0x66   : > { %1812 = vst [vmem:[#allocation23_spill] sm:$0xff] %v1474_v2  ;;  %v1490_v27 = vld [vmem:[%s1257_s6 + $0x198] sm:$0xff] }
  0x67   : > { %v365_v26 = vadd.f32 %v364_v10, %v1437_v6  ;;  %v399_v59 = vadd.f32 %v398_v47, %v1458_v41  ;;  %v523_v47 = vld [vmem:[#allocation7 + $0xf8] sm:$0xff]  ;;  %v520_v41 = vld [vmem:[#allocation7 + $0xe0] sm:$0xff]  ;;  %1814 = vst [vmem:[#allocation25_spill] sm:$0xff] %v1490_v27 }
  0x68   : > { %550 = vmatpush.msra.mxu3 %v523_v47  ;;  %v1503_v47 = vld [vmem:[%s1257_s6 + $0x1b8] sm:$0xff] }
  0x69   : > { %v366_v37 = vadd.f32 %v365_v26, %v1445_v21  ;;  %v400_v10 = vadd.f32 %v399_v59, %v1466_v53  ;;  %v1485_v26 = vld [vmem:[%s1257_s6 + $0x188] sm:$0xff]  ;;  %v1493_v53 = vld [vmem:[%s1257_s6 + $0x1f0] sm:$0xff]  ;;  %1816 = vst [vmem:[#allocation27_spill] sm:$0xff] %v1503_v47 }
  0x6a   : > { %1813 = vst [vmem:[#allocation24_spill] sm:$0xff] %v1485_v26  ;;  %v521_v59 = vld [vmem:[#allocation7 + $0xe8] sm:$0xff] }
  0x6b   : > { %v367_v51 = vadd.f32 %v366_v37, %v1453_v31  ;;  %v401_v33 = vadd.f32 %v400_v10, %v1474_v2  ;;  %v522_v37 = vld [vmem:[#allocation7 + $0xf0] sm:$0xff]  ;;  %v1498_v2 = vld [vmem:[%s1257_s6 + $0x1a8] sm:$0xff]  ;;  %551 = vmatpush.msra.mxu3 %v521_v59  ;;  %v512_v59 = vld [vmem:[#allocation7 + $0xa0] sm:$0xff] }
  0x6c   : > { %530 = vmatpush.msra.mxu2 %v522_v37  ;;  %1815 = vst [vmem:[#allocation26_spill] sm:$0xff] %v1498_v2 }
  0x6d   : > { %v368_v1 = vadd.f32 %v367_v51, %v1461_v45  ;;  %552 = vmatpush.msra.mxu3 %v519_v5 }
  0x6e   : > { %531 = vmatpush.msra.mxu2 %v520_v41 }
  0x6f   : > { %v369_v22 = vadd.f32 %v368_v1, %v1469_v57  ;;  %v402_v1 = vadd.f32 %v401_v33, %v1485_v26  ;;  %v514_v26 = vld [vmem:[#allocation7 + $0xb0] sm:$0xff]  ;;  %553 = vmatpush.msra.mxu3 %v517_v54 }
  0x70   : > { %532 = vmatpush.msra.mxu2 %v518_v17  ;;  %v510_v17 = vld [vmem:[#allocation7 + $0x90] sm:$0xff] }
  0x71   : > { %v370_v51 = vadd.f32 %v369_v22, %v1477_v9  ;;  %v403_v22 = vadd.f32 %v402_v1, %v1490_v27  ;;  %v513_v1 = vld [vmem:[#allocation7 + $0xa8] sm:$0xff]  ;;  %v1511_v27 = vld [vmem:[%s1257_s6 + $0x1d8] sm:$0xff]  ;;  %554 = vmatpush.msra.mxu3 %v515_v48 }
  0x72   : > { %533 = vmatpush.msra.mxu2 %v516_v61  ;;  %v508_v61 = vld [vmem:[#allocation7 + $0x80] sm:$0xff] }
  0x73   : > { %v371_v10 = vadd.f32 %v370_v51, %v1481_v13  ;;  %v404_v33 = vadd.f32 %v403_v22, %v1498_v2  ;;  %v511_v22 = vld [vmem:[#allocation7 + $0x98] sm:$0xff]  ;;  %555 = vmatpush.msra.mxu3 %v513_v1  ;;  %v505_v1 = vld [vmem:[#allocation7 + $0x68] sm:$0xff] }
  0x74   : > { %534 = vmatpush.msra.mxu2 %v514_v26  ;;  %v506_v26 = vld [vmem:[#allocation7 + $0x70] sm:$0xff] }
  0x75   : > { %v372_v37 = vadd.f32 %v371_v10, %v1493_v53  ;;  %v405_v41 = vadd.f32 %v404_v33, %v1503_v47  ;;  %v509_v33 = vld [vmem:[#allocation7 + $0x88] sm:$0xff]  ;;  %556 = vmatpush.msra.mxu3 %v511_v22 }
  0x76   : > { %535 = vmatpush.msra.mxu2 %v512_v59  ;;  %v504_v59 = vld [vmem:[#allocation7 + $0x60] sm:$0xff] }
  0x77   : > { %v373_v51 = vrot.slane %v372_v37, 4  ;;  %v406_v5 = vadd.f32 %v405_v41, %v1507_v42  ;;  %557 = vmatpush.msra.mxu3 %v509_v33 }
  0x78   : > { %536 = vmatpush.msra.mxu2 %v510_v17  ;;  %v503_v17 = vld [vmem:[#allocation7 + $0x58] sm:$0xff] }
  0x79   : > { %v374_v10 = vadd.f32 %v373_v51, %v372_v37  ;;  %v407_v54 = vadd.f32 %v406_v5, %v1511_v27  ;;  %v507_v37 = vld [vmem:[#allocation7 + $0x78] sm:$0xff] }
  0x7a   : > { %537 = vmatpush.msra.mxu2 %v508_v61  ;;  %558 = vmatpush.msra.mxu3 %v507_v37  ;;  %v498_v37 = vld [vmem:[#allocation7 + $0x30] sm:$0xff] }
  0x7b   : > { %v375_v2 = vrot.slane %v374_v10, 2  ;;  %v408_v48 = vadd.f32 %v407_v54, %v1515_v34  ;;  %v500_v54 = vld [vmem:[#allocation7 + $0x40] sm:$0xff]  ;;  %v501_v34 = vld [vmem:[#allocation7 + $0x48] sm:$0xff] }
  0x7c   : > { %538 = vmatpush.msra.mxu2 %v506_v26  ;;  %559 = vmatpush.msra.mxu3 %v505_v1  ;;  %v495_v1 = vld [vmem:[#allocation7 + $0x18] sm:$0xff] }
  0x7d   : > { %v376_v47 = vadd.f32 %v375_v2, %v374_v10  ;;  %v409_v41 = vadd.f32 %v408_v48, %v1519_v29  ;;  %v502_v2 = vld [vmem:[#allocation7 + $0x50] sm:$0xff] }
  0x7e   : > { %539 = vmatpush.msra.mxu2 %v504_v59  ;;  %560 = vmatpush.msra.mxu3 %v503_v17  ;;  %v497_v59 = vld [vmem:[#allocation7 + $0x28] sm:$0xff] }
  0x7f   : > { %v377_v51 = vrot.slane %v376_v47, 1  ;;  %v410_v5 = vrot.slane %v409_v41, 4 }
  0x80   : > { %540 = vmatpush.msra.mxu2 %v502_v2  ;;  %561 = vmatpush.msra.mxu3 %v501_v34  ;;  %v493_v2 = vld [vmem:[#allocation7 + $0x8] sm:$0xff]  ;;  %v450_v34 = vld [vmem:[%s1772_s2] sm:$0x1] }
  0x81   : > { %v378_v42 = vadd.f32 %v377_v51, %v376_v47  ;;  %v411_v22 = vadd.f32 %v410_v5, %v409_v41  ;;  %v499_v51 = vld [vmem:[#allocation7 + $0x38] sm:$0xff]  ;;  %v494_v41 = vld [vmem:[#allocation7 + $0x10] sm:$0xff]  ;;  %v492_v5 = vld [vmem:[#allocation7] sm:$0xff] }
  0x82   : > { %541 = vmatpush.msra.mxu2 %v500_v54  ;;  %562 = vmatpush.msra.mxu3 %v499_v51 }
  0x83   : > { %v416_v10 = vmul.f32 0.00390625, %v378_v42  ;;  %v412_v61 = vrot.slane %v411_v22, 2  ;;  %v496_v42 = vld [vmem:[#allocation7 + $0x20] sm:$0xff] }
  0x84   : > { %542 = vmatpush.msra.mxu2 %v498_v37  ;;  %563 = vmatpush.msra.mxu3 %v497_v59 }
  0x85   : > { %467 = vmatmul.f32.vlgmr.msra.gmra.mxu0 %v416_v10  ;;  %v413_v33 = vadd.f32 %v412_v61, %v411_v22 }
  0x86   : > { %543 = vmatpush.msra.mxu2 %v496_v42  ;;  %564 = vmatpush.msra.mxu3 %v495_v1 }
  0x87   : > { %v414_v48 = vrot.slane %v413_v33, 1 }
  0x88   : > { %544 = vmatpush.msra.mxu2 %v494_v41  ;;  %565 = vmatpush.msra.mxu3 %v493_v2 }
  0x89   : > { %v415_v47 = vadd.f32 %v414_v48, %v413_v33  ;;  %v524_v33 = vld [vmem:[%s1774_s4] sm:$0x3] }
  0x8a   : > { %545 = vmatpush.msra.mxu2 %v492_v5  ;;  %v526_v48 = vperm.slane %v524_v33, 0  ;;  %v527_v51 = vperm.slane %v524_v33, 1 }
  0x8b   : > { %v417_v26 = vmul.f32 0.00390625, %v415_v47 }
  0x8d   : > { %487 = vmatmul.f32.vlgmr.msra.gmra.mxu1 %v417_v26 }
 0x102   : > { %v468_v10 = vpop.f32.mrf.mxu0 }
 0x103   : > { %v469_v17 = vadd.f32 %v468_v10, %v450_v34 }
 0x10a   : > { %v488_v22 = vpop.f32.mrf.mxu1 }
 0x10b   : > { %v489_v54 = vadd.f32 %v488_v22, %v469_v17 }
 0x10d   : > { %v491_v61 = vmax.f32 %v489_v54, 0.0 }
 0x10f   : > { %546 = vmatmul.f32.vlgmr.msra.gmra.mxu2 %v491_v61  ;;  %566 = vmatmul.f32.vlgmr.msra.gmra.mxu3 %v491_v61 }
 0x192   : > { %v547_v47 = vpop.f32.mrf.mxu2  ;;  %v567_v42 = vpop.f32.mrf.mxu3 }
 0x193   : > { %v548_v26 = vadd.f32 %v547_v47, %v526_v48  ;;  %v568_v59 = vadd.f32 %v567_v42, %v527_v51 }
 0x195   : > { %v859_v37 = vmul.f32 -1.442695, %v548_v26  ;;  %v860_v1 = vmul.f32 -1.442695, %v568_v59 }
 0x197   : > { %941 = vpow2.f32 %v859_v37 }
 0x19d   : > { %v942_v41 = vpop.eup %941 }
 0x19e   : > { %v576_v5 = vadd.f32 1.0, %v942_v41 }
 0x1a0   : > { %943 = vrcp.f32 %v576_v5  ;;  %v589_v22 = vand.u32 2147483648, %v576_v5  ;;  %v587_v48 = vand.u32 2147483647, %v576_v5  ;;  %vm583_vm1 = vweird.f32 %v576_v5 }
 0x1a1   : > { %945 = vpow2.f32 %v860_v1 }
 0x1a2   : > { %v590_v47 = vor.u32 1.1754944e-38, %v589_v22  ;;  %vm588_vm3 = vcmp.eq.f32.partialorder %v587_v48, 8.507059e+37 }
 0x1a6   : > { %v944_v2 = vpop.eup %943 }
 0x1a7   : > { %v946_v34 = vpop.eup %945  ;;  %v579_v10 = vmul.f32 %v944_v2, %v576_v5  ;;  %vm584_vm0 = vweird.f32 %v944_v2 }
 0x1a8   : > { %v1529_v54 = vadd.f32 1.0, %v946_v34  ;;  %vm585_vm2 = vmor %vm583_vm1, %vm584_vm0 }
 0x1a9   : > { %v580_v17 = vsub.f32 1.0, %v579_v10 }
 0x1aa   : > { %947 = vrcp.f32 %v1529_v54  ;;  %v604_v22 = vand.u32 2147483648, %v1529_v54  ;;  %vm598_vm5 = vweird.f32 %v1529_v54 }
 0x1ab   : > { %v581_v61 = vmul.f32 %v944_v2, %v580_v17 }
 0x1ac   : > { %v605_v48 = vor.u32 1.1754944e-38, %v604_v22  ;;  %v1835_v22 = vld [vmem:[#allocation28_spill] sm:$0xff] }
 0x1ad   : > { %v582_v33 = vadd.f32 %v944_v2, %v581_v61 }
 0x1af   : > { %v586_v26 = vsel %vm585_vm2, %v944_v2, %v582_v33 }
 0x1b0   : > { %v591_v37 = vsel %vm588_vm3, %v590_v47, %v586_v26  ;;  %v948_v1 = vpop.eup %947  ;;  %v1819_v26 = vld [vmem:[#allocation12_spill] sm:$0xff] }
 0x1b1   : > { %v1532_v51 = vperm.slane %v591_v37, 0  ;;  %vm599_vm4 = vweird.f32 %v948_v1  ;;  %v1820_v37 = vld [vmem:[#allocation13_spill] sm:$0xff] }
 0x1b2   : > { %vm600_vm6 = vmor %vm598_vm5, %vm599_vm4 }
 0x1b3   : > { %v610_v42 = vmul.f32 %v1532_v51, %v1268_v14  ;;  %v612_v59 = vmul.f32 %v1532_v51, %v1271_v15  ;;  %v614_v41 = vmul.f32 %v1532_v51, %v1274_v16  ;;  %v616_v5 = vmul.f32 %v1532_v51, %v1279_v20 }
 0x1b4   : > { %v618_v2 = vmul.f32 %v1532_v51, %v1283_v24  ;;  %v620_v14 = vmul.f32 %v1532_v51, %v1287_v28  ;;  %v622_v15 = vmul.f32 %v1532_v51, %v1291_v32  ;;  %v594_v16 = vmul.f32 %v948_v1, %v1529_v54 }
 0x1b5   : > { %674 = vst [vmem:[%s1546_s12] sm:$0xff] %v610_v42  ;;  %v624_v20 = vmul.f32 %v1532_v51, %v1295_v36  ;;  %v626_v24 = vmul.f32 %v1532_v51, %v1308_v43  ;;  %v628_v28 = vmul.f32 %v1532_v51, %v1317_v49  ;;  %v630_v32 = vmul.f32 %v1532_v51, %v1325_v55  ;;  %v1822_v42 = vld [vmem:[#allocation15_spill] sm:$0xff] }
 0x1b6   : > { %676 = vst [vmem:[%s1546_s12 + $0x10] sm:$0xff] %v612_v59  ;;  %v595_v34 = vsub.f32 1.0, %v594_v16  ;;  %v632_v36 = vmul.f32 %v1532_v51, %v1333_v60  ;;  %v634_v43 = vmul.f32 %v1532_v51, %v1341_v0  ;;  %v636_v49 = vmul.f32 %v1532_v51, %v1349_v4  ;;  %v1823_v59 = vld [vmem:[#allocation16_spill] sm:$0xff] }
 0x1b7   : > { %678 = vst [vmem:[%s1546_s12 + $0x20] sm:$0xff] %v614_v41  ;;  %v638_v55 = vmul.f32 %v1532_v51, %v1357_v8  ;;  %v640_v17 = vmul.f32 %v1532_v51, %v1365_v12  ;;  %v642_v60 = vmul.f32 %v1532_v51, %v1373_v19  ;;  %v644_v0 = vmul.f32 %v1532_v51, %v1381_v25 }
 0x1b8   : > { %680 = vst [vmem:[%s1546_s12 + $0x30] sm:$0xff] %v616_v5  ;;  %v596_v10 = vmul.f32 %v948_v1, %v595_v34  ;;  %v646_v4 = vmul.f32 %v1532_v51, %v1389_v30  ;;  %v648_v12 = vmul.f32 %v1532_v51, %v1397_v35  ;;  %v650_v19 = vmul.f32 %v1532_v51, %v1405_v44  ;;  %v1829_v34 = vld [vmem:[#allocation22_spill] sm:$0xff] }
 0x1b9   : > { %682 = vst [vmem:[%s1546_s12 + $0x40] sm:$0xff] %v618_v2  ;;  %v602_v25 = vand.u32 2147483647, %v1529_v54  ;;  %v652_v30 = vmul.f32 %v1532_v51, %v1413_v50  ;;  %v654_v35 = vmul.f32 %v1532_v51, %v1421_v56  ;;  %v656_v44 = vmul.f32 %v1532_v51, %v1429_v62  ;;  %v1825_v2 = vld [vmem:[#allocation18_spill] sm:$0xff] }
 0x1ba   : > { %684 = vst [vmem:[%s1546_s12 + $0x50] sm:$0xff] %v620_v14  ;;  %v597_v8 = vadd.f32 %v948_v1, %v596_v10  ;;  %v658_v54 = vmul.f32 %v1532_v51, %v1437_v6  ;;  %v660_v50 = vmul.f32 %v1532_v51, %v1445_v21  ;;  %v662_v33 = vmul.f32 %v1532_v51, %v1453_v31 }
 0x1bb   : > { %686 = vst [vmem:[%s1546_s12 + $0x60] sm:$0xff] %v622_v15  ;;  %vm603_vm7 = vcmp.eq.f32.partialorder %v602_v25, 8.507059e+37  ;;  %v664_v62 = vmul.f32 %v1532_v51, %v1461_v45  ;;  %v666_v6 = vmul.f32 %v1532_v51, %v1469_v57  ;;  %v668_v21 = vmul.f32 %v1532_v51, %v1477_v9  ;;  %v1826_v15 = vld [vmem:[#allocation19_spill] sm:$0xff] }
 0x1bc   : > { %688 = vst [vmem:[%s1546_s12 + $0x70] sm:$0xff] %v624_v20  ;;  %v601_v61 = vsel %vm600_vm6, %v948_v1, %v597_v8  ;;  %v670_v31 = vmul.f32 %v1532_v51, %v1481_v13  ;;  %v672_v45 = vmul.f32 %v1532_v51, %v1493_v53  ;;  %v1821_v51 = vld [vmem:[#allocation14_spill] sm:$0xff]  ;;  %v1824_v1 = vld [vmem:[#allocation17_spill] sm:$0xff]  ;;  %v1827_v20 = vld [vmem:[#allocation20_spill] sm:$0xff] }
 0x1bd   : > { %690 = vst [vmem:[%s1546_s12 + $0x80] sm:$0xff] %v626_v24  ;;  %v606_v56 = vsel %vm603_vm7, %v605_v48, %v601_v61  ;;  %v1834_v8 = vld [vmem:[#allocation27_spill] sm:$0xff] }
 0x1be   : > { %692 = vst [vmem:[%s1546_s12 + $0x90] sm:$0xff] %v628_v28  ;;  %v1624_v47 = vperm.slane %v606_v56, 0  ;;  %v1828_v28 = vld [vmem:[#allocation21_spill] sm:$0xff] }
 0x1bf   : > { %694 = vst [vmem:[%s1546_s12 + $0xa0] sm:$0xff] %v630_v32 }
 0x1c0   : > { %696 = vst [vmem:[%s1546_s12 + $0xb0] sm:$0xff] %v632_v36  ;;  %v611_v57 = vmul.f32 %v1624_v47, %v1299_v38  ;;  %v613_v9 = vmul.f32 %v1624_v47, %v1302_v39  ;;  %v615_v13 = vmul.f32 %v1624_v47, %v1305_v40  ;;  %v617_v53 = vmul.f32 %v1624_v47, %v1314_v46 }
 0x1c1   : > { %698 = vst [vmem:[%s1546_s12 + $0xc0] sm:$0xff] %v634_v43  ;;  %v619_v38 = vmul.f32 %v1624_v47, %v1322_v52  ;;  %v621_v39 = vmul.f32 %v1624_v47, %v1330_v58  ;;  %v623_v40 = vmul.f32 %v1624_v47, %v1338_v63  ;;  %v625_v46 = vmul.f32 %v1624_v47, %v1346_v3  ;;  %v1830_v43 = vld [vmem:[#allocation23_spill] sm:$0xff] }
 0x1c2   : > { %700 = vst [vmem:[%s1546_s12 + $0xd0] sm:$0xff] %v636_v49  ;;  %v627_v52 = vmul.f32 %v1624_v47, %v1354_v7  ;;  %v629_v58 = vmul.f32 %v1624_v47, %v1362_v11  ;;  %v631_v63 = vmul.f32 %v1624_v47, %v1370_v18  ;;  %v633_v3 = vmul.f32 %v1624_v47, %v1378_v23 }
 0x1c3   : > { %702 = vst [vmem:[%s1546_s12 + $0xe0] sm:$0xff] %v638_v55  ;;  %v635_v7 = vmul.f32 %v1624_v47, %v1819_v26  ;;  %v637_v11 = vmul.f32 %v1624_v47, %v1820_v37  ;;  %v639_v18 = vmul.f32 %v1624_v47, %v1821_v51  ;;  %v641_v23 = vmul.f32 %v1624_v47, %v1822_v42  ;;  %v1831_v55 = vld [vmem:[#allocation24_spill] sm:$0xff] }
 0x1c4   : > { %704 = vst [vmem:[%s1546_s12 + $0xf0] sm:$0xff] %v640_v17  ;;  %v643_v41 = vmul.f32 %v1624_v47, %v1823_v59  ;;  %v645_v5 = vmul.f32 %v1624_v47, %v1824_v1  ;;  %v647_v14 = vmul.f32 %v1624_v47, %v1825_v2  ;;  %v649_v16 = vmul.f32 %v1624_v47, %v1826_v15  ;;  %v1832_v17 = vld [vmem:[#allocation25_spill] sm:$0xff] }
 0x1c5   : > { %706 = vst [vmem:[%s1546_s12 + $0x100] sm:$0xff] %v642_v60  ;;  %v651_v24 = vmul.f32 %v1624_v47, %v1827_v20  ;;  %v653_v32 = vmul.f32 %v1624_v47, %v1828_v28  ;;  %v655_v36 = vmul.f32 %v1624_v47, %v1829_v34  ;;  %v657_v49 = vmul.f32 %v1624_v47, %v1830_v43 }
 0x1c6   : > { %708 = vst [vmem:[%s1546_s12 + $0x110] sm:$0xff] %v644_v0  ;;  %v659_v10 = vmul.f32 %v1624_v47, %v1831_v55  ;;  %v661_v60 = vmul.f32 %v1624_v47, %v1832_v17  ;;  %v1833_v0 = vld [vmem:[#allocation26_spill] sm:$0xff]  ;;  %v669_v25 = vmul.f32 %v1624_v47, %v1511_v27  ;;  %v673_v61 = vmul.f32 %v1624_v47, %v1519_v29 }
 0x1c7   : > { %710 = vst [vmem:[%s1546_s12 + $0x120] sm:$0xff] %v646_v4  ;;  %v663_v4 = vmul.f32 %v1624_v47, %v1833_v0 }
 0x1c8   : > { %712 = vst [vmem:[%s1546_s12 + $0x130] sm:$0xff] %v648_v12  ;;  %v665_v12 = vmul.f32 %v1624_v47, %v1834_v8 }
 0x1c9   : > { %714 = vst [vmem:[%s1546_s12 + $0x140] sm:$0xff] %v650_v19  ;;  %v667_v19 = vmul.f32 %v1624_v47, %v1835_v22 }
 0x1ca   : > { %716 = vst [vmem:[%s1546_s12 + $0x150] sm:$0xff] %v652_v30  ;;  %v1836_v30 = vld [vmem:[#allocation29_spill] sm:$0xff] }
 0x1cb   : > { %718 = vst [vmem:[%s1546_s12 + $0x160] sm:$0xff] %v654_v35  ;;  %v671_v35 = vmul.f32 %v1624_v47, %v1836_v30 }
 0x1cc   : > { %720 = vst [vmem:[%s1546_s12 + $0x170] sm:$0xff] %v656_v44 }
 0x1cd   : > { %722 = vst [vmem:[%s1546_s12 + $0x180] sm:$0xff] %v658_v54 }
 0x1ce   : > { %724 = vst [vmem:[%s1546_s12 + $0x190] sm:$0xff] %v660_v50 }
 0x1cf   : > { %726 = vst [vmem:[%s1546_s12 + $0x1a0] sm:$0xff] %v662_v33 }
 0x1d0   : > { %728 = vst [vmem:[%s1546_s12 + $0x1b0] sm:$0xff] %v664_v62 }
 0x1d1   : > { %730 = vst [vmem:[%s1546_s12 + $0x1c0] sm:$0xff] %v666_v6 }
 0x1d2   : > { %732 = vst [vmem:[%s1546_s12 + $0x1d0] sm:$0xff] %v668_v21 }
 0x1d3   : > { %734 = vst [vmem:[%s1546_s12 + $0x1e0] sm:$0xff] %v670_v31 }
 0x1d4   : > { %736 = vst [vmem:[%s1546_s12 + $0x1f0] sm:$0xff] %v672_v45 }
 0x1d5   : > { %675 = vst [vmem:[%s1546_s12 + $0x8] sm:$0xff] %v611_v57 }
 0x1d6   : > { %677 = vst [vmem:[%s1546_s12 + $0x18] sm:$0xff] %v613_v9 }
 0x1d7   : > { %679 = vst [vmem:[%s1546_s12 + $0x28] sm:$0xff] %v615_v13 }
 0x1d8   : > { %681 = vst [vmem:[%s1546_s12 + $0x38] sm:$0xff] %v617_v53 }
 0x1d9   : > { %683 = vst [vmem:[%s1546_s12 + $0x48] sm:$0xff] %v619_v38 }
 0x1da   : > { %685 = vst [vmem:[%s1546_s12 + $0x58] sm:$0xff] %v621_v39 }
 0x1db   : > { %687 = vst [vmem:[%s1546_s12 + $0x68] sm:$0xff] %v623_v40 }
 0x1dc   : > { %689 = vst [vmem:[%s1546_s12 + $0x78] sm:$0xff] %v625_v46 }
 0x1dd   : > { %691 = vst [vmem:[%s1546_s12 + $0x88] sm:$0xff] %v627_v52 }
 0x1de   : > { %693 = vst [vmem:[%s1546_s12 + $0x98] sm:$0xff] %v629_v58 }
 0x1df   : > { %695 = vst [vmem:[%s1546_s12 + $0xa8] sm:$0xff] %v631_v63 }
 0x1e0   : > { %697 = vst [vmem:[%s1546_s12 + $0xb8] sm:$0xff] %v633_v3 }
 0x1e1   : > { %699 = vst [vmem:[%s1546_s12 + $0xc8] sm:$0xff] %v635_v7 }
 0x1e2   : > { %701 = vst [vmem:[%s1546_s12 + $0xd8] sm:$0xff] %v637_v11 }
 0x1e3   : > { %703 = vst [vmem:[%s1546_s12 + $0xe8] sm:$0xff] %v639_v18 }
 0x1e4   : > { %705 = vst [vmem:[%s1546_s12 + $0xf8] sm:$0xff] %v641_v23 }
 0x1e5   : > { %707 = vst [vmem:[%s1546_s12 + $0x108] sm:$0xff] %v643_v41 }
 0x1e6   : > { %709 = vst [vmem:[%s1546_s12 + $0x118] sm:$0xff] %v645_v5 }
 0x1e7   : > { %711 = vst [vmem:[%s1546_s12 + $0x128] sm:$0xff] %v647_v14 }
 0x1e8   : > { %713 = vst [vmem:[%s1546_s12 + $0x138] sm:$0xff] %v649_v16 }
 0x1e9   : > { %715 = vst [vmem:[%s1546_s12 + $0x148] sm:$0xff] %v651_v24 }
 0x1ea   : > { %717 = vst [vmem:[%s1546_s12 + $0x158] sm:$0xff] %v653_v32 }
 0x1eb   : > { %719 = vst [vmem:[%s1546_s12 + $0x168] sm:$0xff] %v655_v36 }
 0x1ec   : > { %721 = vst [vmem:[%s1546_s12 + $0x178] sm:$0xff] %v657_v49 }
 0x1ed   : > { %723 = vst [vmem:[%s1546_s12 + $0x188] sm:$0xff] %v659_v10 }
 0x1ee   : > { %725 = vst [vmem:[%s1546_s12 + $0x198] sm:$0xff] %v661_v60 }
 0x1ef   : > { %727 = vst [vmem:[%s1546_s12 + $0x1a8] sm:$0xff] %v663_v4 }
 0x1f0   : > { %729 = vst [vmem:[%s1546_s12 + $0x1b8] sm:$0xff] %v665_v12 }
 0x1f1   : > { %731 = vst [vmem:[%s1546_s12 + $0x1c8] sm:$0xff] %v667_v19 }
 0x1f2   : > { %733 = vst [vmem:[%s1546_s12 + $0x1d8] sm:$0xff] %v669_v25 }
 0x1f3   : > { %735 = vst [vmem:[%s1546_s12 + $0x1e8] sm:$0xff] %v671_v35 }
 0x1f4   : > { %737 = vst [vmem:[%s1546_s12 + $0x1f8] sm:$0xff] %v673_v61 }
 0x1f5   : > { %1066 = shalt.err (!%p1063_p10)
}
 0x1f6   : > { %s1117_s10 = smov 256   ;;  %s1118_s11 = smov 16  }
 0x1f7   : > { %878 = dma.vmem_to_hbm [thread:$0]  (%p1221_p5), %s752_s22, 8192, %s754_s8, %s739_s9, %s1117_s10, %s1117_s10, %s1118_s11  }
 0x1f8 PF: > { %s768_s12 = sand.u32 1, %s1097_s18   ;;  %p1837_p12 = scmp.ge.s32.totalorder %s1109_s21, 2 }
 0x1f9   : > { %s769_s13 = scalar_lea.sflag [#allocation4], %s768_s12 }
 0x1fa   : > { %p892_p13 = pnand %p1837_p12, %p1184_p6 }
 0x1fc   : > { %p893_p0 = pneg %p892_p13 }
 0x1fe   : > { %1092 = dma.done.wait (%p893_p0), %s769_s13, 8192  }
 0x1ff   : > { %1094 = vsyncadd (%p893_p0), %s769_s13, 4294959104  ;;  %p19_p3 = scmp.ge.s32.totalorder %s1208_s16, 4   ;;  %s1838_s18 = smov %s1101_s19 }
 0x200   : > { %s1839_s19 = smov %s1105_s20  ;;  %s1840_s20 = smov %s1217_s26 }
 0x201   : > { %s1841_s21 = smov %s1208_s16  ;;  %21 = sbr.rel (!%p19_p3) target bundleno = 6 (0x6), region = 93 }
 0x206   :  { %775 = vsyncpa [#allocation3], 1 }
 0x207   :  { %777 = vsyncpa [#allocation3 + $0x1], 1 }
 0x208   :  { %778 = vsyncpa [#allocation6], 1 }
 0x209   :  { %779 = vsyncpa [#allocation4], 1 }
 0x20a   :  { %781 = vsyncpa [#allocation4 + $0x1], 1 }

</bundles_post_ra>
